<compile_context>
chip_gen: v6e
topology: v6e:2x2x1
jax: 0.10.0
libtpu: 0.0.40
codegen_flags: <defaults>
</compile_context>

<pallas_src>
import functools

import jax
import jax.numpy as jnp
from jax.experimental import pallas as pl
from jax.experimental.pallas import tpu as pltpu


def _round_up(x, m):
    return ((x + m - 1) // m) * m


# ----------------------------------------------------------------------------
# Pallas kernel 1: HeavyPrompt forward (grid over batch, one graph per step).
# Per graph emits (M = T + N, M_pad = round_up(M, 128)):
#   A     (M_pad, M_pad) bf16 = [[prune(sig(tok tok^T)), prune(sig(tok x^T))],
#                                [          0          ,        g_adj       ]]
#   x_cat (M_pad, D)     f32  = [tokens ; g.x]  (rows >= M are zero)
# The bulk of A is assembled in-register and written with one lane-dense store.
# ----------------------------------------------------------------------------
def _prompt_kernel(T, N, D, M_pad,
                   prune_ref, tok_ref, x_ref, g_ref, a_ref, xcat_ref):
    inner_prune = prune_ref[0]          # SMEM scalars (runtime-adjustable)
    cross_prune = prune_ref[1]
    M = T + N

    # --- x_cat = [tokens ; g.x ; zeros]: zero the whole block (lane-dense),
    #     then overwrite the two small real row ranges (tiny masked stores).
    xcat_ref[...] = jnp.zeros((M_pad, D), jnp.float32)
    xcat_ref[pl.ds(0, T), :] = tok_ref[...]
    xcat_ref[pl.ds(T, N), :] = x_ref[...]

    # --- one MXU call covers BOTH sigmoid blocks:
    #     S = sigmoid(x_cat @ x_cat^T); rows<T, cols<T is the token-token block,
    #     rows<T, T<=cols<M is the token->node cross block.
    xc = xcat_ref[...].astype(jnp.bfloat16)           # native bf16 MXU path
    dn = (((1,), (1,)), ((), ()))                      # contract dim 1 of both
    s = jax.nn.sigmoid(
        jax.lax.dot_general(xc, xc, dn, preferred_element_type=jnp.float32))

    # 1-D row / col masks broadcast inside the where (no 2-D iota vreg pressure).
    ridx = jax.lax.broadcasted_iota(jnp.int32, (M_pad, 1), 0)
    cidx = jax.lax.broadcasted_iota(jnp.int32, (1, M_pad), 1)
    row_tok = ridx < T
    col_tok = cidx < T
    col_node = (cidx >= T) & (cidx < M)

    # per-column threshold: inner_prune on token cols, cross_prune on node cols
    thr = jnp.where(col_tok, inner_prune, cross_prune)        # (1, M_pad)
    keep = row_tok & (col_tok | col_node) & (s >= thr)
    a_ref[...] = jnp.where(keep, s, 0.0).astype(jnp.bfloat16)  # ONE lane-dense store

    # --- node-node quadrant = original g_adj (node->token quadrant stays zero,
    #     matching the reference which only emits directed token->node edges).
    # TODO(synk): at production N route this pure copy through
    # pltpu.make_async_copy (DMA engine) and row-tile the A out_spec
    # (grid=(B, M_pad//TILE_M)) with an explicit vmem_limit_bytes.
    a_ref[pl.ds(T, N), pl.ds(T, N)] = g_ref[...].astype(jnp.bfloat16)


def heavy_prompt_forward(tokens, x_batch, g_adj, inner_prune, cross_prune):
    """tokens: (T, D), x_batch: (B, N, D), g_adj: (B, N, N) -> (A bf16, x_cat f32)."""
    T, D = tokens.shape
    B, N, _ = x_batch.shape
    M_pad = _round_up(T + N, 128)

    prunes = jnp.array([inner_prune, cross_prune], jnp.float32)
    kernel = functools.partial(_prompt_kernel, T, N, D, M_pad)

    A, x_cat = pl.pallas_call(
        kernel,
        out_shape=(
            jax.ShapeDtypeStruct((B, M_pad, M_pad), jnp.bfloat16),
            jax.ShapeDtypeStruct((B, M_pad, D), jnp.float32),
        ),
        grid_spec=pltpu.PrefetchScalarGridSpec(
            num_scalar_prefetch=0,
            grid=(B,),
            in_specs=[
                pl.BlockSpec(memory_space=pltpu.MemorySpace.SMEM),   # thresholds
                pl.BlockSpec((T, D), lambda b: (0, 0)),              # tokens (unpadded)
                pl.BlockSpec((None, N, D), lambda b: (b, 0, 0)),     # g.x    (unpadded)
                pl.BlockSpec((None, N, N), lambda b: (b, 0, 0)),     # g_adj  (unpadded)
            ],
            out_specs=[
                pl.BlockSpec((None, M_pad, M_pad), lambda b: (b, 0, 0)),
                pl.BlockSpec((None, M_pad, D), lambda b: (b, 0, 0)),
            ],
        ),
        # Every output block is per-graph -> batch axis shards across v7x's two
        # TensorCores; harmless on v5e/v6e.  Scoped VMEM raised explicitly
        # (v5e default is 16 MiB) -- at demo scale usage is tiny, but at
        # production N the A out block must additionally be row-tiled (see TODO
        # in the kernel) to stay inside v7x's 64 MiB physical VMEM.
        compiler_params=pltpu.CompilerParams(
            dimension_semantics=("parallel",),
            vmem_limit_bytes=32 * 1024 * 1024),
    )(prunes, tokens, x_batch, g_adj)
    return A, x_cat


# ----------------------------------------------------------------------------
# Pallas kernel 2: answering head = Linear(hid_dim, num_classes) + Softmax(dim=1)
# (lane-dense padded block; padded classes masked to -inf; exact divide since
#  these probabilities feed a loss / reference comparison)
# NOTE: at this size the launch overhead dominates the ~1 us of math; folding
# the mean-pool + linear + softmax into one kernel is the next step if the
# external gnn ever becomes a Pallas kernel itself.
# ----------------------------------------------------------------------------
def _answering_kernel(C, emb_ref, w_ref, b_ref, out_ref):
    logits = jnp.dot(emb_ref[...], w_ref[...],
                     preferred_element_type=jnp.float32) + b_ref[...]
    col = jax.lax.broadcasted_iota(jnp.int32, (1, logits.shape[1]), 1)
    logits = jnp.where(col < C, logits, -1e30)          # mask padded classes
    m = jnp.max(logits, axis=-1, keepdims=True)
    e = jnp.exp(logits - m)
    out_ref[...] = e / jnp.sum(e, axis=-1, keepdims=True)   # exact softmax


def answering_forward(graph_emb, w, b):
    """graph_emb: (B, H), w: (H, C), b: (1, C) -> (B, C) softmax probs."""
    B, H = graph_emb.shape
    C = w.shape[1]
    B_pad = _round_up(B, 8)
    H_pad = _round_up(H, 128)
    C_pad = _round_up(C, 128)

    emb_p = jnp.zeros((B_pad, H_pad), jnp.float32).at[:B, :H].set(graph_emb)
    w_p = jnp.zeros((H_pad, C_pad), jnp.float32).at[:H, :C].set(w)
    b_p = jnp.zeros((1, C_pad), jnp.float32).at[:, :C].set(b)

    out = pl.pallas_call(
        functools.partial(_answering_kernel, C),
        out_shape=jax.ShapeDtypeStruct((B_pad, C_pad), jnp.float32),
        grid_spec=pltpu.PrefetchScalarGridSpec(
            num_scalar_prefetch=0,
            grid=(1,),
            in_specs=[
                pl.BlockSpec((B_pad, H_pad), lambda i: (0, 0)),
                pl.BlockSpec((H_pad, C_pad), lambda i: (0, 0)),
                pl.BlockSpec((1, C_pad), lambda i: (0, 0)),
            ],
            out_specs=pl.BlockSpec((B_pad, C_pad), lambda i: (0, 0)),
        ),
    )(emb_p, w_p, b_p)
    return out[:B, :C]


# ----------------------------------------------------------------------------
# External `gnn` argument (plain JAX): dense 2-layer GCN + mean pool over the
# real node count.  Padded rows/cols of A / x_cat are zero, so they only pick
# up a unit self-loop with zero features -> contribute nothing to propagation
# or to the pooled embedding.
# ----------------------------------------------------------------------------
def make_dense_gcn(key, in_dim, hid_dim):
    k1, k2 = jax.random.split(key)
    s1 = 1.0 / jnp.sqrt(jnp.float32(in_dim))
    s2 = 1.0 / jnp.sqrt(jnp.float32(hid_dim))
    W1 = jax.random.uniform(k1, (in_dim, hid_dim), jnp.float32, -s1, s1)
    W2 = jax.random.uniform(k2, (hid_dim, hid_dim), jnp.float32, -s2, s2)

    def gnn(x, adj, num_nodes):
        # x: (B, M_pad, D) f32, adj: (B, M_pad, M_pad) bf16 dense (self-loops added)
        M = x.shape[1]
        a = adj.astype(jnp.float32) + jnp.eye(M, dtype=jnp.float32)[None]
        deg = jnp.sum(a, axis=-1, keepdims=True)
        a = a / jnp.maximum(deg, 1.0)
        h = jax.nn.relu(jnp.einsum("bij,bjd->bid", a, x) @ W1)
        h = jnp.einsum("bij,bjd->bid", a, h) @ W2
        return jnp.sum(h, axis=1) / jnp.float32(num_nodes)   # mean over real nodes

    return gnn


# ----------------------------------------------------------------------------
# FrontAndHead parameters + forward
# ----------------------------------------------------------------------------
def init_front_and_head(key, input_dim, hid_dim, num_classes, token_num):
    k_tok, k_w, k_b = jax.random.split(key, 3)
    # tokens: kaiming_uniform_(nonlinearity='leaky_relu', a=0.01, mode='fan_in')
    a = 0.01
    gain = jnp.sqrt(2.0 / (1.0 + a * a))
    bound_tok = gain * jnp.sqrt(3.0 / jnp.float32(input_dim))
    tokens = jax.random.uniform(k_tok, (token_num, input_dim), jnp.float32,
                                -bound_tok, bound_tok)
    # Linear(hid_dim, num_classes): torch default init
    bound_w = 1.0 / jnp.sqrt(jnp.float32(hid_dim))
    w = jax.random.uniform(k_w, (hid_dim, num_classes), jnp.float32, -bound_w, bound_w)
    b = jax.random.uniform(k_b, (1, num_classes), jnp.float32, -bound_w, bound_w)
    return {"tokens": tokens, "ans_w": w, "ans_b": b}


def front_and_head_forward(params, x_batch, g_adj, gnn,
                           cross_prune=0.1, inner_prune=0.3):
    """x_batch: (B, N, D) node features, g_adj: (B, N, N) original dense adjacency."""
    tokens = params["tokens"]
    T = tokens.shape[0]
    N = x_batch.shape[1]

    # HeavyPrompt forward: assembled adjacency + concatenated features emitted
    # straight from the Pallas kernel (no XLA zeros / update-slice / pad glue).
    # TODO(synk): edge_index via .nonzero() is dynamic-shape; the prompted graph
    # is represented by its dense (padded, zero-masked) adjacency instead.
    A, x_cat = heavy_prompt_forward(tokens, x_batch, g_adj,
                                    inner_prune, cross_prune)

    # external gnn (opaque callable in the PyTorch forward)
    graph_emb = gnn(x_cat, A, num_nodes=T + N)          # (B, hid_dim)

    # answering head (Pallas kernel)
    return answering_forward(graph_emb, params["ans_w"], params["ans_b"])


if __name__ == "__main__":
    input_dim = 32
    hid_dim = 16
    num_classes = 2
    token_num = 10
    B, N = 2, 8  # 2 graphs, 8 nodes each

    key = jax.random.PRNGKey(0)
    k_par, k_gnn, k_x, k_adj = jax.random.split(key, 4)

    params = init_front_and_head(k_par, input_dim, hid_dim, num_classes, token_num)
    gnn = make_dense_gcn(k_gnn, input_dim, hid_dim)

    x_batch = jax.random.normal(k_x, (B, N, input_dim), jnp.float32)
    g_adj = (jax.random.uniform(k_adj, (B, N, N)) < 0.3).astype(jnp.float32)

    @jax.jit
    def fwd(p, x, a):
        return front_and_head_forward(p, x, a, gnn,
                                      cross_prune=0.1, inner_prune=0.3)

    pre = jax.block_until_ready(fwd(params, x_batch, g_adj))

    assert pre.shape == (B, num_classes)
    assert bool(jnp.all(jnp.isfinite(pre)))
    # exact softmax divide -> rows sum to 1 to float precision
    assert bool(jnp.allclose(jnp.sum(pre, axis=1), 1.0, atol=1e-5))
    print("KERNEL_OK")
</pallas_src>

<mosaic_0001>
module attributes {stable_mosaic.version = 11 : i64} {
  func.func @_prompt_kernel(%arg0: i32, %arg1: memref<2xf32, #tpu.memory_space<smem>>, %arg2: memref<10x32xf32, #tpu.memory_space<vmem>>, %arg3: memref<1x8x32xf32, #tpu.memory_space<vmem>>, %arg4: memref<1x8x8xf32, #tpu.memory_space<vmem>>, %arg5: memref<1x128x128xbf16, #tpu.memory_space<vmem>>, %arg6: memref<1x128x32xf32, #tpu.memory_space<vmem>>) attributes {dimension_semantics = [#tpu.dimension_semantics<parallel>], iteration_bounds = array<i64: 2>, scalar_prefetch = 0 : i64, scratch_operands = 0 : i64, tpu.core_type = #tpu.core_type<tc>, window_params = [{transform_indices = @transform_0, window_bounds = array<i64: 2>}, {pipeline_mode = #tpu.pipeline_mode<synchronous>, transform_indices = @transform_1, window_bounds = array<i64: 10, 32>}, {transform_indices = @transform_2, window_bounds = array<i64: 1, 8, 32>}, {transform_indices = @transform_3, window_bounds = array<i64: 1, 8, 8>}, {transform_indices = @transform_4, window_bounds = array<i64: 1, 128, 128>}, {transform_indices = @transform_5, window_bounds = array<i64: 1, 128, 32>}]} {
    %c0 = arith.constant 0 : index
    %0 = memref.load %arg1[%c0] : memref<2xf32, #tpu.memory_space<smem>>
    %c1 = arith.constant 1 : index
    %1 = memref.load %arg1[%c1] : memref<2xf32, #tpu.memory_space<smem>>
    %cst = arith.constant 0.000000e+00 : f32
    %2 = vector.broadcast %cst : f32 to vector<128x32xf32>
    %c0_0 = arith.constant 0 : index
    %c0_1 = arith.constant 0 : index
    %c0_2 = arith.constant 0 : index
    %3 = vector.load %arg6[%c0_0, %c0_1, %c0_2] : memref<1x128x32xf32, #tpu.memory_space<vmem>>, vector<1x128x32xf32>
    %4 = vector.shape_cast %3 : vector<1x128x32xf32> to vector<128x32xf32>
    %5 = vector.shape_cast %2 : vector<128x32xf32> to vector<1x128x32xf32>
    tpu.vector_store %arg6[%c0_0, %c0_1, %c0_2], %5 {strides = array<i32>} : memref<1x128x32xf32, #tpu.memory_space<vmem>>, vector<1x128x32xf32>,
    %c0_3 = arith.constant 0 : index
    %c0_4 = arith.constant 0 : index
    %6 = vector.load %arg2[%c0_3, %c0_4] : memref<10x32xf32, #tpu.memory_space<vmem>>, vector<10x32xf32>
    %c0_5 = arith.constant 0 : index
    %c0_6 = arith.constant 0 : index
    %c0_7 = arith.constant 0 : index
    %7 = vector.load %arg6[%c0_5, %c0_6, %c0_7] : memref<1x128x32xf32, #tpu.memory_space<vmem>>, vector<1x10x32xf32>
    %8 = vector.shape_cast %7 : vector<1x10x32xf32> to vector<10x32xf32>
    %9 = vector.shape_cast %6 : vector<10x32xf32> to vector<1x10x32xf32>
    tpu.vector_store %arg6[%c0_5, %c0_6, %c0_7], %9 {strides = array<i32>} : memref<1x128x32xf32, #tpu.memory_space<vmem>>, vector<1x10x32xf32>,
    %c0_8 = arith.constant 0 : index
    %c0_9 = arith.constant 0 : index
    %c0_10 = arith.constant 0 : index
    %10 = vector.load %arg3[%c0_8, %c0_9, %c0_10] : memref<1x8x32xf32, #tpu.memory_space<vmem>>, vector<1x8x32xf32>
    %11 = vector.shape_cast %10 : vector<1x8x32xf32> to vector<8x32xf32>
    %c0_11 = arith.constant 0 : index
    %c10 = arith.constant 10 : index
    %c0_12 = arith.constant 0 : index
    %12 = vector.load %arg6[%c0_11, %c10, %c0_12] : memref<1x128x32xf32, #tpu.memory_space<vmem>>, vector<1x8x32xf32>
    %13 = vector.shape_cast %12 : vector<1x8x32xf32> to vector<8x32xf32>
    %14 = vector.shape_cast %11 : vector<8x32xf32> to vector<1x8x32xf32>
    tpu.vector_store %arg6[%c0_11, %c10, %c0_12], %14 {strides = array<i32>} : memref<1x128x32xf32, #tpu.memory_space<vmem>>, vector<1x8x32xf32>,
    %c0_13 = arith.constant 0 : index
    %c0_14 = arith.constant 0 : index
    %c0_15 = arith.constant 0 : index
    %15 = vector.load %arg6[%c0_13, %c0_14, %c0_15] : memref<1x128x32xf32, #tpu.memory_space<vmem>>, vector<1x128x32xf32>
    %16 = vector.shape_cast %15 : vector<1x128x32xf32> to vector<128x32xf32>
    %17 = arith.truncf %16 : vector<128x32xf32> to vector<128x32xbf16>
    %cst_16 = arith.constant dense<0.000000e+00> : vector<128x128xf32>
    %18 = tpu.matmul %17, %17, %cst_16 {dimension_numbers = #tpu.dot_dimension_numbers<[1], [1], [0], [0], [0, 0, 1, 0], [], []>} : vector<128x32xbf16>, vector<128x32xbf16>, vector<128x128xf32> -> vector<128x128xf32>
    %19 = arith.negf %18 : vector<128x128xf32>
    %20 = math.exp %19 : vector<128x128xf32>
    %cst_17 = arith.constant 1.000000e+00 : f32
    %21 = vector.broadcast %cst_17 : f32 to vector<128x128xf32>
    %22 = arith.addf %21, %20 : vector<128x128xf32>
    %23 = arith.divf %21, %22 : vector<128x128xf32>
    %24 = tpu.iota {dimensions = array<i32: 0>} : vector<128x1xi32>
    %25 = tpu.iota {dimensions = array<i32: 1>} : vector<1x128xi32>
    %c10_i32 = arith.constant 10 : i32
    %26 = vector.broadcast %c10_i32 : i32 to vector<128x1xi32>
    %27 = arith.cmpi slt, %24, %26 : vector<128x1xi32>
    %c10_i32_18 = arith.constant 10 : i32
    %28 = vector.broadcast %c10_i32_18 : i32 to vector<1x128xi32>
    %29 = arith.cmpi slt, %25, %28 : vector<1x128xi32>
    %c10_i32_19 = arith.constant 10 : i32
    %30 = vector.broadcast %c10_i32_19 : i32 to vector<1x128xi32>
    %31 = arith.cmpi sge, %25, %30 : vector<1x128xi32>
    %c18_i32 = arith.constant 18 : i32
    %32 = vector.broadcast %c18_i32 : i32 to vector<1x128xi32>
    %33 = arith.cmpi slt, %25, %32 : vector<1x128xi32>
    %34 = arith.andi %31, %33 : vector<1x128xi1>
    %35 = vector.broadcast %0 : f32 to vector<1x128xf32>
    %36 = vector.broadcast %1 : f32 to vector<1x128xf32>
    %37 = arith.select %29, %35, %36 : vector<1x128xi1>, vector<1x128xf32>
    %38 = arith.ori %29, %34 : vector<1x128xi1>
    %39 = vector.broadcast %27 : vector<128x1xi1> to vector<128x128xi1>
    %40 = vector.broadcast %38 : vector<1x128xi1> to vector<128x128xi1>
    %41 = arith.andi %39, %40 : vector<128x128xi1>
    %42 = vector.broadcast %37 : vector<1x128xf32> to vector<128x128xf32>
    %43 = arith.cmpf oge, %23, %42 : vector<128x128xf32>
    %44 = arith.andi %41, %43 : vector<128x128xi1>
    %cst_20 = arith.constant 0.000000e+00 : f32
    %45 = vector.broadcast %cst_20 : f32 to vector<128x128xf32>
    %46 = arith.select %44, %23, %45 : vector<128x128xi1>, vector<128x128xf32>
    %47 = arith.truncf %46 : vector<128x128xf32> to vector<128x128xbf16>
    %c0_21 = arith.constant 0 : index
    %c0_22 = arith.constant 0 : index
    %c0_23 = arith.constant 0 : index
    %48 = vector.load %arg5[%c0_21, %c0_22, %c0_23] : memref<1x128x128xbf16, #tpu.memory_space<vmem>>, vector<1x128x128xbf16>
    %49 = vector.shape_cast %48 : vector<1x128x128xbf16> to vector<128x128xbf16>
    %50 = vector.shape_cast %47 : vector<128x128xbf16> to vector<1x128x128xbf16>
    tpu.vector_store %arg5[%c0_21, %c0_22, %c0_23], %50 {strides = array<i32>} : memref<1x128x128xbf16, #tpu.memory_space<vmem>>, vector<1x128x128xbf16>,
    %c0_24 = arith.constant 0 : index
    %c0_25 = arith.constant 0 : index
    %c0_26 = arith.constant 0 : index
    %51 = vector.load %arg4[%c0_24, %c0_25, %c0_26] : memref<1x8x8xf32, #tpu.memory_space<vmem>>, vector<1x8x8xf32>
    %52 = vector.shape_cast %51 : vector<1x8x8xf32> to vector<8x8xf32>
    %53 = arith.truncf %52 : vector<8x8xf32> to vector<8x8xbf16>
    %c0_27 = arith.constant 0 : index
    %c10_28 = arith.constant 10 : index
    %c10_29 = arith.constant 10 : index
    %54 = vector.load %arg5[%c0_27, %c10_28, %c10_29] : memref<1x128x128xbf16, #tpu.memory_space<vmem>>, vector<1x8x8xbf16>
    %55 = vector.shape_cast %54 : vector<1x8x8xbf16> to vector<8x8xbf16>
    %56 = vector.shape_cast %53 : vector<8x8xbf16> to vector<1x8x8xbf16>
    tpu.vector_store %arg5[%c0_27, %c10_28, %c10_29], %56 {strides = array<i32>} : memref<1x128x128xbf16, #tpu.memory_space<vmem>>, vector<1x8x8xbf16>,
    return
  }
  func.func @transform_0(%arg0: i32) -> i32 {
    %c0_i32 = arith.constant 0 : i32
    %c0_i32_0 = arith.constant 0 : i32
    return %c0_i32 : i32
  }
  func.func @transform_1(%arg0: i32) -> (i32, i32) {
    %c0_i32 = arith.constant 0 : i32
    %c0_i32_0 = arith.constant 0 : i32
    %c0_i32_1 = arith.constant 0 : i32
    return %c0_i32, %c0_i32_0 : i32, i32
  }
  func.func @transform_2(%arg0: i32) -> (i32, i32, i32) {
    %c0_i32 = arith.constant 0 : i32
    %c0_i32_0 = arith.constant 0 : i32
    %c0_i32_1 = arith.constant 0 : i32
    return %arg0, %c0_i32, %c0_i32_0 : i32, i32, i32
  }
  func.func @transform_3(%arg0: i32) -> (i32, i32, i32) {
    %c0_i32 = arith.constant 0 : i32
    %c0_i32_0 = arith.constant 0 : i32
    %c0_i32_1 = arith.constant 0 : i32
    return %arg0, %c0_i32, %c0_i32_0 : i32, i32, i32
  }
  func.func @transform_4(%arg0: i32) -> (i32, i32, i32) {
    %c0_i32 = arith.constant 0 : i32
    %c0_i32_0 = arith.constant 0 : i32
    %c0_i32_1 = arith.constant 0 : i32
    return %arg0, %c0_i32, %c0_i32_0 : i32, i32, i32
  }
  func.func @transform_5(%arg0: i32) -> (i32, i32, i32) {
    %c0_i32 = arith.constant 0 : i32
    %c0_i32_0 = arith.constant 0 : i32
    %c0_i32_1 = arith.constant 0 : i32
    return %arg0, %c0_i32, %c0_i32_0 : i32, i32, i32
  }
}

module attributes {stable_mosaic.version = 11 : i64} {
  func.func @_answering_kernel(%arg0: i32, %arg1: memref<8x128xf32, #tpu.memory_space<vmem>>, %arg2: memref<128x128xf32, #tpu.memory_space<vmem>>, %arg3: memref<1x128xf32, #tpu.memory_space<vmem>>, %arg4: memref<8x128xf32, #tpu.memory_space<vmem>>) attributes {dimension_semantics = [#tpu.dimension_semantics<arbitrary>], iteration_bounds = array<i64: 1>, scalar_prefetch = 0 : i64, scratch_operands = 0 : i64, tpu.core_type = #tpu.core_type<tc>, window_params = [{pipeline_mode = #tpu.pipeline_mode<synchronous>, transform_indices = @transform_0, window_bounds = array<i64: 8, 128>}, {pipeline_mode = #tpu.pipeline_mode<synchronous>, transform_indices = @transform_1, window_bounds = array<i64: 128, 128>}, {pipeline_mode = #tpu.pipeline_mode<synchronous>, transform_indices = @transform_2, window_bounds = array<i64: 1, 128>}, {pipeline_mode = #tpu.pipeline_mode<synchronous>, transform_indices = @transform_3, window_bounds = array<i64: 8, 128>}]} {
    %c0 = arith.constant 0 : index
    %c0_0 = arith.constant 0 : index
    %0 = vector.load %arg1[%c0, %c0_0] : memref<8x128xf32, #tpu.memory_space<vmem>>, vector<8x128xf32>
    %c0_1 = arith.constant 0 : index
    %c0_2 = arith.constant 0 : index
    %1 = vector.load %arg2[%c0_1, %c0_2] : memref<128x128xf32, #tpu.memory_space<vmem>>, vector<128x128xf32>
    %cst = arith.constant dense<0.000000e+00> : vector<8x128xf32>
    %2 = tpu.matmul %0, %1, %cst {dimension_numbers = #tpu.dot_dimension_numbers<[1], [0], [0], [1], [0, 0, 1, 1], [], []>} : vector<8x128xf32>, vector<128x128xf32>, vector<8x128xf32> -> vector<8x128xf32>
    %c0_3 = arith.constant 0 : index
    %c0_4 = arith.constant 0 : index
    %3 = vector.load %arg3[%c0_3, %c0_4] : memref<1x128xf32, #tpu.memory_space<vmem>>, vector<1x128xf32>
    %4 = vector.broadcast %3 : vector<1x128xf32> to vector<8x128xf32>
    %5 = arith.addf %2, %4 : vector<8x128xf32>
    %6 = tpu.iota {dimensions = array<i32: 1>} : vector<1x128xi32>
    %c2_i32 = arith.constant 2 : i32
    %7 = vector.broadcast %c2_i32 : i32 to vector<1x128xi32>
    %8 = arith.cmpi slt, %6, %7 : vector<1x128xi32>
    %cst_5 = arith.constant -1.000000e+30 : f32
    %9 = vector.shape_cast %8 : vector<1x128xi1> to vector<1x128xi1>
    %10 = vector.broadcast %9 : vector<1x128xi1> to vector<8x128xi1>
    %11 = vector.broadcast %cst_5 : f32 to vector<8x128xf32>
    %12 = arith.select %10, %5, %11 : vector<8x128xi1>, vector<8x128xf32>
    %cst_6 = arith.constant dense<0xFF800000> : vector<8xf32>
    %13 = vector.multi_reduction <maximumf>, %12, %cst_6 [1] : vector<8x128xf32> to vector<8xf32>
    %14 = vector.shape_cast %13 : vector<8xf32> to vector<8x1xf32>
    %15 = vector.broadcast %14 : vector<8x1xf32> to vector<8x128xf32>
    %16 = arith.subf %12, %15 : vector<8x128xf32>
    %17 = math.exp %16 : vector<8x128xf32>
    %cst_7 = arith.constant dense<0.000000e+00> : vector<8xf32>
    %18 = vector.multi_reduction <add>, %17, %cst_7 [1] : vector<8x128xf32> to vector<8xf32>
    %19 = vector.shape_cast %18 : vector<8xf32> to vector<8x1xf32>
    %20 = vector.broadcast %19 : vector<8x1xf32> to vector<8x128xf32>
    %21 = arith.divf %17, %20 : vector<8x128xf32>
    %c0_8 = arith.constant 0 : index
    %c0_9 = arith.constant 0 : index
    %22 = vector.load %arg4[%c0_8, %c0_9] : memref<8x128xf32, #tpu.memory_space<vmem>>, vector<8x128xf32>
    tpu.vector_store %arg4[%c0_8, %c0_9], %21 {strides = array<i32>} : memref<8x128xf32, #tpu.memory_space<vmem>>, vector<8x128xf32>,
    return
  }
  func.func @transform_0(%arg0: i32) -> (i32, i32) {
    %c0_i32 = arith.constant 0 : i32
    %c0_i32_0 = arith.constant 0 : i32
    %c0_i32_1 = arith.constant 0 : i32
    return %c0_i32, %c0_i32_0 : i32, i32
  }
  func.func @transform_1(%arg0: i32) -> (i32, i32) {
    %c0_i32 = arith.constant 0 : i32
    %c0_i32_0 = arith.constant 0 : i32
    %c0_i32_1 = arith.constant 0 : i32
    return %c0_i32, %c0_i32_0 : i32, i32
  }
  func.func @transform_2(%arg0: i32) -> (i32, i32) {
    %c0_i32 = arith.constant 0 : i32
    %c0_i32_0 = arith.constant 0 : i32
    %c0_i32_1 = arith.constant 0 : i32
    return %c0_i32, %c0_i32_0 : i32, i32
  }
  func.func @transform_3(%arg0: i32) -> (i32, i32) {
    %c0_i32 = arith.constant 0 : i32
    %c0_i32_0 = arith.constant 0 : i32
    %c0_i32_1 = arith.constant 0 : i32
    return %c0_i32, %c0_i32_0 : i32, i32
  }
}

</mosaic_0001>

<bundles_post_ra>
// kernel: fwd.2
= control target key start
LH: loop header
LB: loop body
LE: loop exit
PB: predicated region body
PF: predicated region fallthrough
CT: control target
= control target key end

     0   :  { %11 = vsyncpa [#allocation4], 0  ;;  %s1693_s0 = inlined_call_operand.vmem [shape: f32[2], index: 0, kind: input, shape index: {}]   ;;  %s1694_s1 = inlined_call_operand.hbm [shape: f32[10,32], index: 1, kind: input, shape index: {}]   ;;  %s1695_s2 = inlined_call_operand.hbm [shape: f32[2,8,32], index: 2, kind: input, shape index: {}]   ;;  %s1696_s3 = inlined_call_operand.hbm [shape: f32[2,8,8], index: 3, kind: input, shape index: {}]   ;;  %s1697_s4 = inlined_call_operand.vmem [shape: bf16[2,128,128], index: 4, kind: output, shape index: {0}]   ;;  %s1698_s5 = inlined_call_operand.vmem [shape: f32[2,128,32], index: 5, kind: output, shape index: {1}]  }
   0x1   :  { %12 = vsyncpa [#allocation3], 0 }
   0x2   :  { %13 = vsyncpa [#allocation7], 0 }
   0x3   :  { %15 = vsyncpa [#allocation7 + $0x1], 0  ;;  %s1378_s18 = smov 0   ;;  %s1380_s19 = smov 0  }
   0x4   :  { %s1382_s20 = smov 0   ;;  %s1384_s21 = smov 0  }
   0x5 LB: > { %s1399_s22 = sadd.s32 1, %s1337_s21   ;;  %s70_s23 = sadd.s32 1, %s1333_s20  ;;  %s1337_s21 = sphi %s1384_s21, %s1721_s21   ;;  %s1333_s20 = sphi %s1382_s20, %s1720_s20   ;;  %s1329_s19 = sphi %s1380_s19, %s1719_s19   ;;  %s1325_s18 = sphi %s1378_s18, %s1718_s18  }
   0x6   : > { %s67_s24 = ssub.s32 %s1337_s21, %s1399_s22  ;;  %p77_p0 = scmp.ne.s32.totalorder %s1333_s20, %s1329_s19 }
   0x7   : > { %p68_p1 = scmp.eq.s32.totalorder %s67_s24, 0  ;;  %p78_p2 = scmp.eq.s32.totalorder %s1337_s21, 0 }
   0x8   : > { %p1148_p3 = scmp.lt.s32.totalorder %s1337_s21, 2  ;;  %s209_s26 = sand.u32 1, %s1337_s21  }
   0x9   : > { %s1409_s25 = scalar_select %p68_p1, %s1333_s20, %s70_s23  }
   0xa   : > { %p79_p4 = por %p78_p2, %p77_p0  ;;  %s211_s27 = sand.u32 1, %s1333_s20  }
   0xb   : > { %s1413_s28 = sshll.u32 %s211_s27, 3  ;;  %s974_s29 = sshll.u32 %s1337_s21, 7 }
   0xc   : > { %s1421_s7 = scalar_lea.hbm %s1695_s2, %s974_s29  ;;  %s213_s8 = scalar_lea.vmem [#allocation6], %s1413_s28 }
   0xd   : > { %s220_s9 = sshll.u32 %s213_s8, 4  ;;  %p1424_p5 = pnand %p1148_p3, %p79_p4  ;;  %s221_s9 = int_to_ptr.vmem [resolvable:$true] %s220_s9 }
   0xe   : > { %s1428_s11 = scalar_lea.sflag [#allocation7], %s209_s26  ;;  %s1198_s12 = scalar_lea.hbm %s1421_s7, 128 }
   0xf   : > { %s1705_s10 = scalar_select %p1424_p5, 1, 0 }
  0x10   : > { %p1199_p6 = scmp.ne.s32.totalorder %s1421_s7, %s1198_s12  ;;  %p1699_p7 = pneg %p1424_p5 }
  0x11   : > { %s1203_s15 = scalar_lea.hbm %s1695_s2, 256  ;;  %p1204_p10 = scmp.lt.s32.totalorder %s1421_s7, %s1695_s2 }
  0x12   : > { %p1201_p8 = pnand %p1699_p7, %p1199_p6  ;;  %p1205_p11 = scmp.lt.s32.totalorder %s1203_s15, %s1198_s12 }
  0x14   : > { %p1202_p9 = pneg %p1201_p8  ;;  %p1206_p12 = por %p1205_p11, %p1204_p10 }
  0x16   : > { %p1207_p13 = pnand %p1206_p12, %p1202_p9 }
  0x18   : > { %1210 = shalt.err (!%p1207_p13)
}
  0x19   : > { %s1211_s23 = scalar_lea.vmem %s221_s9, 128  ;;  %s1339_s24 = smov [#allocation6]  }
  0x1a   : > { %p1212_p0 = scmp.ne.s32.totalorder %s221_s9, %s1211_s23  ;;  %s1216_s26 = sshll.u32 %s1339_s24, 4  ;;  %s1217_s26 = int_to_ptr.vmem [resolvable:$false] %s1216_s26 }
  0x1b   : > { %s1218_s27 = scalar_lea.vmem %s1217_s26, 256  ;;  %p1219_p3 = scmp.lt.s32.totalorder %s221_s9, %s1217_s26 }
  0x1c   : > { %p1214_p1 = pnand %p1212_p0, %p1699_p7  ;;  %p1220_p4 = scmp.lt.s32.totalorder %s1218_s27, %s1211_s23 }
  0x1e   : > { %p1215_p2 = pneg %p1214_p1  ;;  %p1221_p6 = por %p1220_p4, %p1219_p3 }
  0x20   : > { %p1222_p8 = pnand %p1221_p6, %p1215_p2 }
  0x22   : > { %1225 = shalt.err (!%p1222_p8)
}
  0x23   : > { %1142 = dma.hbm_to_vmem [thread:$0]  (!%p1424_p5), %s1421_s7, 128, %s221_s9, %s1428_s11  }
  0x24   : > { %s1452_s30 = sadd.s32 4294967295, %s1337_s21   ;;  %p83_p10 = scmp.ne.s32.totalorder %s1329_s19, %s1325_s18 }
  0x25   : > { %p1700_p9 = scmp.eq.s32.totalorder %s1452_s30, 0  ;;  %p969_p11 = scmp.ge.s32.totalorder %s1337_s21, 1 }
  0x26   : > { %p172_p12 = scmp.lt.s32.totalorder %s1337_s21, 3  ;;  %s185_s13 = sshll.u32 %s1693_s0, 4  ;;  %s186_s13 = int_to_ptr.vmem [resolvable:$true] %s185_s13 }
  0x27   : > { %p1461_p13 = por %p1700_p9, %p83_p10  ;;  %s1473_s14 = scalar_lea.hbm %s1696_s3, %s974_s29 }
  0x28   : > { %p1475_p0 = pnand %p969_p11, %p172_p12  ;;  %s1340_s18 = smov [#allocation5]  }
  0x29   : > { %s1706_s6 = scalar_select %p1461_p13, 1, 0 }
  0x2a   : > { %s1707_s15 = scalar_select %p1475_p0, 1, 0 }
  0x2b   : > { %p1132_p1 = pneg %p1475_p0  ;;  %s195_s16 = sshll.u32 %s1340_s18, 4  ;;  %s1481_s16 = int_to_ptr.vmem [resolvable:$true] %s195_s16 }
  0x2c   : > { %s231_s29 = scalar_lea.vmem [#allocation8], %s1413_s28  ;;  %s1226_s23 = scalar_lea.vmem %s186_s13, 16 }
  0x2d   : > { %p1485_p2 = pnand %p1132_p1, %p1700_p9  ;;  %s238_s17 = sshll.u32 %s231_s29, 4  ;;  %s1490_s17 = int_to_ptr.vmem [resolvable:$true] %s238_s17 }
  0x2e   : > { %p1227_p3 = scmp.ne.s32.totalorder %s186_s13, %s1226_s23  ;;  %p1234_p10 = scmp.lt.s32.totalorder %s186_s13, %s186_s13 }
  0x2f   : > { %p1228_p4 = pneg %p1485_p2  ;;  %p1235_p11 = scmp.lt.s32.totalorder %s1226_s23, %s1226_s23 }
  0x31   : > { %p1229_p6 = pnand %p1228_p4, %p1227_p3  ;;  %p1236_p12 = por %p1235_p11, %p1234_p10 }
  0x33   : > { %p1230_p8 = pneg %p1229_p6 }
  0x35   : > { %p1237_p7 = pnand %p1236_p12, %p1230_p8 }
  0x37   : > { %1240 = shalt.err (!%p1237_p7)
}
  0x38   : > { %s1341_s24 = smov [#allocation2]   ;;  %s1252_s28 = scalar_lea.vmem %s1481_s16, 256 }
  0x39   : > { %1135 = dma.vmem_to_smem (!%p1485_p2), %s186_s13, 16, %s1341_s24, [#allocation4]  }
  0x3a   : > { %p1253_p1 = scmp.ne.s32.totalorder %s1481_s16, %s1252_s28  ;;  %p1260_p0 = scmp.lt.s32.totalorder %s1481_s16, %s1481_s16 }
  0x3b   : > { %p1261_p3 = scmp.lt.s32.totalorder %s1252_s28, %s1252_s28 }
  0x3c   : > { %p1255_p9 = pnand %p1253_p1, %p1228_p4 }
  0x3d   : > { %p1262_p6 = por %p1261_p3, %p1260_p0 }
  0x3e   : > { %p1256_p13 = pneg %p1255_p9 }
  0x40   : > { %p1263_p5 = pnand %p1262_p6, %p1256_p13 }
  0x42   : > { %1266 = shalt.err (!%p1263_p5)
}
  0x43   : > { %s1342_s26 = smov 128   ;;  %s1343_s27 = smov 8  }
  0x44   : > { %1138 = dma.hbm_to_vmem [thread:$0]  (!%p1485_p2), %s1694_s1, 256, %s1481_s16, [#allocation3], %s1342_s26, %s1342_s26, %s1343_s27  }
  0x45   : > { %s1267_s13 = scalar_lea.hbm %s1473_s14, 128  ;;  %p1709_p9 = scmp.ne.s32.totalorder %s1705_s10, 0 }
  0x46   : > { %p1268_p7 = scmp.ne.s32.totalorder %s1473_s14, %s1267_s13  ;;  %s1272_s18 = scalar_lea.hbm %s1696_s3, 256 }
  0x47   : > { %p1710_p4 = pneg %p1709_p9  ;;  %p1273_p5 = scmp.lt.s32.totalorder %s1473_s14, %s1696_s3 }
  0x48   : > { %p1274_p8 = scmp.lt.s32.totalorder %s1272_s18, %s1267_s13 }
  0x49   : > { %p1270_p0 = pnand %p1268_p7, %p1710_p4 }
  0x4a   : > { %p1275_p10 = por %p1274_p8, %p1273_p5 }
  0x4b   : > { %p1271_p13 = pneg %p1270_p0 }
  0x4d   : > { %p1276_p11 = pnand %p1275_p10, %p1271_p13 }
  0x4f   : > { %1279 = shalt.err (!%p1276_p11)
}
  0x50   : > { %s1280_s16 = scalar_lea.vmem %s1490_s17, 128  ;;  %p1711_p12 = pmov %p1710_p4 }
  0x51   : > { %p1281_p2 = scmp.ne.s32.totalorder %s1490_s17, %s1280_s16  ;;  %s1344_s21 = smov [#allocation8]  }
  0x52   : > { %s1285_s24 = sshll.u32 %s1344_s21, 4  ;;  %s1286_s24 = int_to_ptr.vmem [resolvable:$false] %s1285_s24 }
  0x53   : > { %p1283_p1 = pnand %p1281_p2, %p1711_p12  ;;  %s1287_s28 = scalar_lea.vmem %s1286_s24, 256 }
  0x54   : > { %p1288_p6 = scmp.lt.s32.totalorder %s1490_s17, %s1286_s24  ;;  %p1289_p7 = scmp.lt.s32.totalorder %s1287_s28, %s1280_s16 }
  0x55   : > { %p1284_p3 = pneg %p1283_p1 }
  0x56   : > { %p1290_p4 = por %p1289_p7, %p1288_p6 }
  0x58   : > { %p1291_p0 = pnand %p1290_p4, %p1284_p3 }
  0x5a   : > { %1294 = shalt.err (!%p1291_p0)
}
  0x5b   : > { %1145 = dma.hbm_to_vmem [thread:$0]  (!%p1709_p9), %s1473_s14, 128, %s1490_s17, %s1428_s11  }
  0x5c   : > { %p1712_p13 = scmp.ne.s32.totalorder %s1707_s15, 0 }
  0x5d   : > { %p1713_p5 = scmp.eq.s32.totalorder (!%p1712_p13), %s1452_s30, 0 }
  0x5e   : > { %247 = sbr.rel (%p1712_p13) target bundleno = 427 (0x1ab), region = 36 }
  0x63   : > { %1312 = dma.done.wait (%p1713_p5), [#allocation4], 16   ;;  %p1714_p8 = pmov %p1713_p5 }
  0x64   : > { %p1715_p10 = pmov %p1713_p5 }
  0x65   : > { %1314 = vsyncadd (%p1714_p8), [#allocation4], 4294967280 }
  0x66   : > { %1316 = dma.done.wait (%p1715_p10), [#allocation3], 256   ;;  %p1716_p11 = pmov %p1713_p5 }
  0x67   : > { %s257_s10 = sand.u32 1, %s1452_s30   ;;  %s259_s11 = sand.u32 1, %s1329_s19  }
  0x68   : > { %1318 = vsyncadd (%p1716_p11), [#allocation3], 4294967040  ;;  %s980_s14 = sshll.u32 %s259_s11, 3  ;;  %s258_s15 = scalar_lea.sflag [#allocation7], %s257_s10 }
  0x69   : > { %s261_s17 = scalar_lea.vmem [#allocation6], %s980_s14  ;;  %p1717_p9 = scmp.ne.s32.totalorder %s1706_s6, 0 }
  0x6b   : > { %1320 = dma.done.wait (%p1717_p9), %s258_s15, 256  }
  0x6c   : > { %1322 = vsyncadd (%p1717_p9), %s258_s15, 4294967040  ;;  %s270_s26 = scalar_lea.vmem [#allocation8], %s980_s14 }
  0x6d   : > { %275 = sfence }
  0x6e   : > { %p308_p2 = scmp.lt.s32.totalorder %s1452_s30, 1  ;;  %v807_v0 = vld [vmem:[%s270_s26] sm:$0xff]  ;;  %vm321_vm0 = vcmask 261120   ;;  %v343_v2 = vld [vmem:[%s261_s17] sm:$0xff]  ;;  %vm341_vm1 = vcmask 254976   ;;  %v1345_v6 = vmov 0.0  }
  0x6f   : > { %v1034_v1 = vpack.c.bf16 %v807_v0, %v807_v0  ;;  %v338_v3 = vld [vmem:[#allocation5] sm:$0xff]  ;;  %v339_v4 = vld [vmem:[#allocation5 + $0x8] sm:$0x3]  ;;  %s1346_s13 = smov 10   ;;  %v1347_v41 = vmov 0.0|0.0   ;;  %vm822_vm2 = vcmask 139344  }
  0x70   : > { %s1723_s30 = smov (!%p308_p2, %s1452_s30), 1  ;;  %v1013_v42 = vcombine.low %v1347_v41, %v1347_v41  ;;  %v1014_v43 = vcombine.high %v1347_v41, %v1347_v41  ;;  %s986_s23 = sld [smem:[#allocation2 + $0x1]]  ;;  %vm820_vm14 = vcmask 142417  }
  0x71   : > { %s1031_s27 = sshll.u32 %s1723_s30, 7  ;;  %v812_v5 = vrot.slane %v1034_v1, 7  ;;  %s1030_s7 = sshll.u32 %s1723_s30, 6  ;;  %v586_v1 = vlaneseq }
  0x72   : > { %s1553_s12 = scalar_lea.vmem %s1698_s5, %s1031_s27  ;;  %s1659_s29 = scalar_lea.vmem %s1697_s4, %s1030_s7 }
  0x73   : > { %336 = vst.msk [vmem:[%s1553_s12 + $0x70] sm:$0xff] %vm321_vm0, %v1345_v6  ;;  %337 = vst.msk [vmem:[%s1553_s12 + $0x78] sm:$0xff] %vm321_vm0, %v1345_v6  ;;  %814 = vrot.lane.b32.xlu0 %v812_v5, %s1346_s13  ;;  %v813_v7 = vrot.slane %v812_v5, 4  ;;  %s319_s30 = sld [smem:[#allocation2]]  ;;  %v587_v5 = vshrl.u32 %v586_v1, 7 }
  0x74   : > { %322 = vst.msk [vmem:[%s1553_s12] sm:$0xff] %vm321_vm0, %v1345_v6  ;;  %323 = vst.msk [vmem:[%s1553_s12 + $0x8] sm:$0xff] %vm321_vm0, %v1345_v6 }
  0x75   : > { %324 = vst.msk [vmem:[%s1553_s12 + $0x10] sm:$0xff] %vm321_vm0, %v1345_v6  ;;  %325 = vst.msk [vmem:[%s1553_s12 + $0x18] sm:$0xff] %vm321_vm0, %v1345_v6 }
  0x76   : > { %326 = vst.msk [vmem:[%s1553_s12 + $0x20] sm:$0xff] %vm321_vm0, %v1345_v6  ;;  %327 = vst.msk [vmem:[%s1553_s12 + $0x28] sm:$0xff] %vm321_vm0, %v1345_v6 }
  0x77   : > { %328 = vst.msk [vmem:[%s1553_s12 + $0x30] sm:$0xff] %vm321_vm0, %v1345_v6  ;;  %329 = vst.msk [vmem:[%s1553_s12 + $0x38] sm:$0xff] %vm321_vm0, %v1345_v6  ;;  %816 = vrot.lane.b32.xlu0 %v813_v7, %s1346_s13  ;;  %v626_v7 = vstv %s986_s23 }
  0x78   : > { %330 = vst.msk [vmem:[%s1553_s12 + $0x40] sm:$0xff] %vm321_vm0, %v1345_v6  ;;  %331 = vst.msk [vmem:[%s1553_s12 + $0x48] sm:$0xff] %vm321_vm0, %v1345_v6 }
  0x79   : > { %332 = vst.msk [vmem:[%s1553_s12 + $0x50] sm:$0xff] %vm321_vm0, %v1345_v6  ;;  %333 = vst.msk [vmem:[%s1553_s12 + $0x58] sm:$0xff] %vm321_vm0, %v1345_v6 }
  0x7a   : > { %334 = vst.msk [vmem:[%s1553_s12 + $0x60] sm:$0xff] %vm321_vm0, %v1345_v6  ;;  %335 = vst.msk [vmem:[%s1553_s12 + $0x68] sm:$0xff] %vm321_vm0, %v1345_v6  ;;  %v359_v8 = vld [vmem:[%s1553_s12 + $0x70] sm:$0xff]  ;;  %v360_v9 = vld [vmem:[%s1553_s12 + $0x78] sm:$0xff] }
  0x7b   : > { %344 = vst.msk [vmem:[%s1553_s12 + $0xa] sm:$0xff] %vm321_vm0, %v343_v2  ;;  %340 = vst.msk [vmem:[%s1553_s12] sm:$0xff] %vm321_vm0, %v338_v3  ;;  %v1596_v11 = vpack.c.bf16 %v360_v9, %v359_v8  ;;  %v625_v6 = vstv %s319_s30  ;;  %v588_v8 = vadd.s32 8, %v587_v5 }
  0x7c   : > { %342 = vst.msk [vmem:[%s1553_s12 + $0x8] sm:$0x3] %vm341_vm1, %v339_v4  ;;  %v348_v35 = vld [vmem:[%s1553_s12 + $0x18] sm:$0xff]  ;;  %793 = vst [vmem:[%s1659_s29 + $0x8] sm:$0xf] %v1013_v42  ;;  %v604_v4 = vand.u32 127, %v586_v1 }
  0x7d   : > { %1104 = vmatprep.subr.msk.bf16.mxu0 %vm321_vm0, %v1596_v11  ;;  %v391_v16 = vsel %vm321_vm0, %v1596_v11, 0  ;;  %1105 = vmatprep.subr.msk.bf16.mxu1 %vm321_vm0, %v1596_v11  ;;  %v349_v30 = vld [vmem:[%s1553_s12 + $0x20] sm:$0xff]  ;;  %v350_v31 = vld [vmem:[%s1553_s12 + $0x28] sm:$0xff]  ;;  %795 = vst [vmem:[%s1659_s29 + $0x10] sm:$0xf] %v1013_v42  ;;  %vm606_vm7 = vcmp.lt.s32.totalorder %v588_v8, 10 }
  0x7e   : > { %1057 = vmatpush3.bf16.xpose.msra.mxu0 %v391_v16  ;;  %1096 = vmatpush3.bf16.xpose.msra.mxu1 %v391_v16  ;;  %v351_v26 = vld [vmem:[%s1553_s12 + $0x30] sm:$0xff]  ;;  %v352_v27 = vld [vmem:[%s1553_s12 + $0x38] sm:$0xff]  ;;  %v363_v33 = vpack.c.bf16 %v350_v31, %v349_v30  ;;  %797 = vst [vmem:[%s1659_s29 + $0x18] sm:$0xf] %v1013_v42  ;;  %799 = vst [vmem:[%s1659_s29 + $0x20] sm:$0xf] %v1013_v42 }
  0x7f   : > { %v353_v14 = vld [vmem:[%s1553_s12 + $0x40] sm:$0xff]  ;;  %v354_v15 = vld [vmem:[%s1553_s12 + $0x48] sm:$0xff]  ;;  %v364_v29 = vpack.c.bf16 %v352_v27, %v351_v26  ;;  %801 = vst [vmem:[%s1659_s29 + $0x28] sm:$0xf] %v1013_v42  ;;  %803 = vst [vmem:[%s1659_s29 + $0x30] sm:$0xf] %v1013_v42 }
  0x80   : > { %v365_v17 = vpack.c.bf16 %v354_v15, %v353_v14  ;;  %v355_v20 = vld [vmem:[%s1553_s12 + $0x50] sm:$0xff]  ;;  %v356_v21 = vld [vmem:[%s1553_s12 + $0x58] sm:$0xff]  ;;  %v376_v36 = vsel %vm321_vm0, %v363_v33, 0  ;;  %805 = vst [vmem:[%s1659_s29 + $0x38] sm:$0xf] %v1013_v42  ;;  %vm621_vm3 = vcmp.lt.s32.totalorder %v604_v4, 10 }
  0x81   : > { %v357_v10 = vld [vmem:[%s1553_s12 + $0x60] sm:$0xff]  ;;  %v358_v12 = vld [vmem:[%s1553_s12 + $0x68] sm:$0xff]  ;;  %v366_v24 = vpack.c.bf16 %v356_v21, %v355_v20  ;;  %v379_v32 = vsel %vm321_vm0, %v364_v29, 0  ;;  %794 = vst [vmem:[%s1659_s29 + $0xc] sm:$0xf] %v1014_v43  ;;  %vm622_vm4 = vcmp.ge.s32.totalorder %v604_v4, 10  ;;  %v627_v9 = vsel %vm621_vm3, %v625_v6, %v626_v7 }
  0x82   : > { %v1599_v13 = vpack.c.bf16 %v358_v12, %v357_v10  ;;  %v345_v18 = vld [vmem:[%s1553_s12] sm:$0xff]  ;;  %1080 = vmatprep.mubr.msk.bf16.mxu1 %vm321_vm0, %v365_v17  ;;  %v382_v28 = vsel %vm321_vm0, %v365_v17, 0  ;;  %v347_v34 = vld [vmem:[%s1553_s12 + $0x10] sm:$0xff]  ;;  %796 = vst [vmem:[%s1659_s29 + $0x14] sm:$0xf] %v1014_v43  ;;  %vm623_vm5 = vcmp.lt.s32.totalorder %v604_v4, 18 }
  0x83   : > { %v346_v19 = vld [vmem:[%s1553_s12 + $0x8] sm:$0xff]  ;;  %v385_v25 = vsel %vm321_vm0, %v366_v24, 0  ;;  %v362_v37 = vpack.c.bf16 %v348_v35, %v347_v34  ;;  %798 = vst [vmem:[%s1659_s29 + $0x1c] sm:$0xf] %v1014_v43  ;;  %800 = vst [vmem:[%s1659_s29 + $0x24] sm:$0xf] %v1014_v43 }
  0x84   : > { %1106 = vmatprep.subr.msk.bf16.mxu0 %vm321_vm0, %v1599_v13  ;;  %1107 = vmatprep.subr.msk.bf16.mxu1 %vm321_vm0, %v1599_v13  ;;  %v361_v22 = vpack.c.bf16 %v346_v19, %v345_v18  ;;  %v388_v23 = vsel %vm321_vm0, %v1599_v13, 0  ;;  %802 = vst [vmem:[%s1659_s29 + $0x2c] sm:$0xf] %v1014_v43  ;;  %804 = vst [vmem:[%s1659_s29 + $0x34] sm:$0xf] %v1014_v43 }
  0x85   : > { %v373_v38 = vsel %vm321_vm0, %v362_v37, 0  ;;  %806 = vst [vmem:[%s1659_s29 + $0x3c] sm:$0xf] %v1014_v43  ;;  %vm624_vm6 = vmand %vm622_vm4, %vm623_vm5 }
  0x86   : > { %1072 = vmatprep.mubr.msk.bf16.mxu0 %vm321_vm0, %v361_v22  ;;  %1059 = vmatpush3.bf16.xpose.msra.mxu0 %v388_v23  ;;  %v370_v39 = vsel %vm321_vm0, %v361_v22, 0  ;;  %vm628_vm8 = vmor %vm621_vm3, %vm624_vm6 }
  0x87   : > { %1097 = vmatpush3.bf16.xpose.msra.mxu1 %v388_v23  ;;  %1108 = vmatprep.subr.msk.bf16.mxu0 %vm321_vm0, %v366_v24  ;;  %vm664_vm10 = vmand %vm606_vm7, %vm628_vm8 }
  0x88   : > { %1109 = vmatprep.subr.msk.bf16.mxu1 %vm321_vm0, %v366_v24 }
  0x8e   : > { %1061 = vmatpush3.bf16.xpose.msra.mxu0 %v385_v25 }
  0x8f   : > { %1098 = vmatpush3.bf16.xpose.msra.mxu1 %v385_v25  ;;  %1110 = vmatprep.subr.msk.bf16.mxu0 %vm321_vm0, %v365_v17 }
  0x90   : > { %1111 = vmatprep.subr.msk.bf16.mxu1 %vm321_vm0, %v365_v17 }
  0x96   : > { %1063 = vmatpush3.bf16.xpose.msra.mxu0 %v382_v28 }
  0x97   : > { %1099 = vmatpush3.bf16.xpose.msra.mxu1 %v382_v28  ;;  %1112 = vmatprep.subr.msk.bf16.mxu0 %vm321_vm0, %v364_v29 }
  0x98   : > { %1113 = vmatprep.subr.msk.bf16.mxu1 %vm321_vm0, %v364_v29 }
  0x9e   : > { %1065 = vmatpush3.bf16.xpose.msra.mxu0 %v379_v32 }
  0x9f   : > { %1100 = vmatpush3.bf16.xpose.msra.mxu1 %v379_v32  ;;  %1114 = vmatprep.subr.msk.bf16.mxu0 %vm321_vm0, %v363_v33 }
  0xa0   : > { %1115 = vmatprep.subr.msk.bf16.mxu1 %vm321_vm0, %v363_v33 }
  0xa6   : > { %1067 = vmatpush3.bf16.xpose.msra.mxu0 %v376_v36 }
  0xa7   : > { %1101 = vmatpush3.bf16.xpose.msra.mxu1 %v376_v36  ;;  %1116 = vmatprep.subr.msk.bf16.mxu0 %vm321_vm0, %v362_v37 }
  0xa8   : > { %1117 = vmatprep.subr.msk.bf16.mxu1 %vm321_vm0, %v362_v37 }
  0xae   : > { %1069 = vmatpush3.bf16.xpose.msra.mxu0 %v373_v38 }
  0xaf   : > { %1102 = vmatpush3.bf16.xpose.msra.mxu1 %v373_v38  ;;  %1118 = vmatprep.subr.msk.bf16.mxu0 %vm321_vm0, %v361_v22 }
  0xb0   : > { %1119 = vmatprep.subr.msk.bf16.mxu1 %vm321_vm0, %v361_v22 }
  0xb6   : > { %1071 = vmatpush3.bf16.xpose.msra.mxu0 %v370_v39 }
  0xb7   : > { %1103 = vmatpush3.bf16.xpose.msra.mxu1 %v370_v39 }
  0xbd   : > { %1073 = vmatmul.mubr.msk.bf16.vlgmr.msra.gmra.mxu0 %vm321_vm0, %v362_v37 }
  0xbe   : > { %1081 = vmatmul.mubr.msk.bf16.vlgmr.msra.gmra.mxu1 %vm321_vm0, %v366_v24  ;;  %1076 = vmatprep.mubr.msk.bf16.mxu0 %vm321_vm0, %v363_v33 }
  0xbf   : > { %1084 = vmatprep.mubr.msk.bf16.mxu1 %vm321_vm0, %v1599_v13 }
  0xc5   : > { %1077 = vmatmul.mubr.msk.bf16.gmra.mxu0 %vm321_vm0, %v364_v29 }
  0xc6   : > { %1085 = vmatmul.mubr.msk.bf16.gmra.mxu1 %vm321_vm0, %v1596_v11 }
  0xe5   : > { %v1653_v40 = vpop.permute.xlu0 %814 }
  0xe9   : > { %v817_v44 = vpop.permute.xlu0 %816 }
  0xea   : > { %823 = vst.msk [vmem:[%s1659_s29 + $0x8] sm:$0x1] %vm822_vm2, %v817_v44 }
 0x17d   : > { %v1074_v45 = vpop.f32.mrf.mxu0 }
 0x17e   : > { %v1082_v46 = vpop.f32.mrf.mxu1 }
 0x17f   : > { %v427_v47 = vpop.f32.mrf.mxu0 }
 0x180   : > { %v459_v48 = vpop.f32.mrf.mxu1  ;;  %v995_v49 = vmul.f32 -1.442695, %v427_v47 }
 0x181   : > { %v1075_v50 = vpop.f32.mrf.mxu0 }
 0x182   : > { %v1083_v51 = vpop.f32.mrf.mxu1  ;;  %1190 = vpow2.f32 %v995_v49 }
 0x183   : > { %v430_v52 = vpop.f32.mrf.mxu0 }
 0x184   : > { %v462_v53 = vpop.f32.mrf.mxu1  ;;  %v996_v54 = vmul.f32 -1.442695, %v430_v52 }
 0x185   : > { %v1078_v55 = vpop.f32.mrf.mxu0 }
 0x186   : > { %v1086_v56 = vpop.f32.mrf.mxu1  ;;  %1192 = vpow2.f32 %v996_v54 }
 0x187   : > { %v443_v57 = vpop.f32.mrf.mxu0 }
 0x188   : > { %v475_v58 = vpop.f32.mrf.mxu1 }
 0x189   : > { %v1079_v59 = vpop.f32.mrf.mxu0 }
 0x18a   : > { %v1087_v60 = vpop.f32.mrf.mxu1 }
 0x18b   : > { %v446_v61 = vpop.f32.mrf.mxu0 }
 0x18c   : > { %v478_v62 = vpop.f32.mrf.mxu1 }
 0x18f   : > { %v1191_v63 = vpop.eup %1190 }
 0x190   : > { %v538_v0 = vadd.f32 1.0, %v1191_v63 }
 0x192   : > { %1194 = vrcp.f32 %v538_v0 }
 0x193   : > { %v1193_v2 = vpop.eup %1192 }
 0x194   : > { %v539_v3 = vadd.f32 1.0, %v1193_v2 }
 0x196   : > { %1196 = vrcp.f32 %v539_v3 }
 0x19f   : > { %v1195_v10 = vpop.eup %1194 }
 0x1a0   : > { %vm679_vm9 = vcmp.ge.f32.partialorder %v1195_v10, %v627_v9 }
 0x1a1   : > { %vm695_vm11 = vmand %vm628_vm8, %vm679_vm9 }
 0x1a2   : > { %v711_v12 = vsel %vm695_vm11, %v1195_v10, 0.0 }
 0x1a3   : > { %v1197_v11 = vpop.eup %1196 }
 0x1a4   : > { %vm680_vm12 = vcmp.ge.f32.partialorder %v1197_v11, %v627_v9 }
 0x1a5   : > { %vm696_vm13 = vmand %vm664_vm10, %vm680_vm12 }
 0x1a6   : > { %v712_v13 = vsel %vm696_vm13, %v1197_v11, 0.0 }
 0x1a7   : > { %v1038_v14 = vpack.c.bf16 %v712_v13, %v711_v12 }
 0x1a9   : > { %1039 = vst [vmem:[%s1659_s29] sm:$0xff] %v1038_v14  }
 0x1aa   : > { %821 = vst.msk [vmem:[%s1659_s29 + $0x4] sm:$0xe] %vm820_vm14, %v1653_v40 }
 0x1ab PF: > { %p18_p12 = scmp.ge.s32.totalorder %s1399_s22, 4   ;;  %s1718_s18 = smov %s1329_s19 }
 0x1ac   : > { %s1719_s19 = smov %s1333_s20  ;;  %s1720_s20 = smov %s1409_s25 }
 0x1ad   : > { %s1721_s21 = smov %s1399_s22  ;;  %20 = sbr.rel (!%p18_p12) target bundleno = 5 (0x5), region = 109 }
 0x1b2   :  { %861 = vsyncpa [#allocation3], 1 }
 0x1b3   :  { %863 = vsyncpa [#allocation3 + $0x1], 1 }
 0x1b4   :  { %864 = vsyncpa [#allocation7], 1 }
 0x1b5   :  { %866 = vsyncpa [#allocation7 + $0x1], 1 }
 0x1b6   :  { %867 = vsyncpa [#allocation4], 1 }
 0x1b7   :  { %869 = vsyncpa [#allocation4 + $0x1], 1 }

// kernel: fwd.3
= control target key start
LH: loop header
LB: loop body
LE: loop exit
PB: predicated region body
PF: predicated region fallthrough
CT: control target
= control target key end

     0   :  { %v187_v0 = vmov 0.0   ;;  %vm188_vm0 = vmmov 0   ;;  %v108_v18 = vlaneseq  ;;  %s266_s1 = inlined_call_operand.vmem [shape: f32[128,128], index: 1, kind: input, shape index: {}]   ;;  %s267_s0 = inlined_call_operand.vmem [shape: f32[8,128], index: 0, kind: input, shape index: {}]   ;;  %s268_s2 = inlined_call_operand.vmem [shape: f32[1,128], index: 2, kind: input, shape index: {}]   ;;  %s269_s3 = inlined_call_operand.vmem [shape: f32[8,128], index: 3, kind: output, shape index: {}]  }
   0x1   :  { %146 = vmatprep.subr.mxu0 %v187_v0  ;;  %v30_v1 = vld [vmem:[%s266_s1 + $0x78] sm:$0xff]  ;;  %v29_v2 = vld [vmem:[%s266_s1 + $0x70] sm:$0xff]  ;;  %178 = vmatprep.mubr.msk.f32.mxu0 %vm188_vm0, %v187_v0  ;;  %v28_v3 = vld [vmem:[%s266_s1 + $0x68] sm:$0xff] }
   0x2   :  { %147 = vmatpush3.msra.mxu0 %v30_v1  ;;  %v27_v4 = vld [vmem:[%s266_s1 + $0x60] sm:$0xff]  ;;  %v26_v5 = vld [vmem:[%s266_s1 + $0x58] sm:$0xff]  ;;  %v25_v6 = vld [vmem:[%s266_s1 + $0x50] sm:$0xff]  ;;  %v109_v19 = vand.u32 127, %v108_v18 }
   0x3   :  { %148 = vmatprep.subr.mxu0 %v187_v0  ;;  %v24_v7 = vld [vmem:[%s266_s1 + $0x48] sm:$0xff]  ;;  %v23_v8 = vld [vmem:[%s266_s1 + $0x40] sm:$0xff]  ;;  %v22_v9 = vld [vmem:[%s266_s1 + $0x38] sm:$0xff] }
   0x4   :  { %149 = vmatpush3.msra.mxu0 %v29_v2  ;;  %v21_v10 = vld [vmem:[%s266_s1 + $0x30] sm:$0xff]  ;;  %v20_v11 = vld [vmem:[%s266_s1 + $0x28] sm:$0xff]  ;;  %v19_v12 = vld [vmem:[%s266_s1 + $0x20] sm:$0xff]  ;;  %vm110_vm1 = vcmp.lt.s32.totalorder %v109_v19, 2 }
   0x5   :  { %150 = vmatprep.subr.mxu0 %v187_v0  ;;  %v18_v13 = vld [vmem:[%s266_s1 + $0x18] sm:$0xff]  ;;  %v17_v14 = vld [vmem:[%s266_s1 + $0x10] sm:$0xff]  ;;  %v16_v15 = vld [vmem:[%s266_s1 + $0x8] sm:$0xff] }
   0x6   :  { %151 = vmatpush3.msra.mxu0 %v28_v3  ;;  %v15_v16 = vld [vmem:[%s266_s1] sm:$0xff] }
   0x7   :  { %152 = vmatprep.subr.mxu0 %v187_v0  ;;  %v14_v17 = vld [vmem:[%s267_s0] sm:$0xff] }
   0x8   :  { %153 = vmatpush3.msra.mxu0 %v27_v4  ;;  %v128_v20 = vld [vmem:[%s268_s2] ss:$0 sm:$0xff] }
   0x9   :  { %154 = vmatprep.subr.mxu0 %v187_v0 }
   0xa   :  { %155 = vmatpush3.msra.mxu0 %v26_v5 }
   0xb   :  { %156 = vmatprep.subr.mxu0 %v187_v0 }
   0xc   :  { %157 = vmatpush3.msra.mxu0 %v25_v6 }
   0xd   :  { %158 = vmatprep.subr.mxu0 %v187_v0 }
   0xe   :  { %159 = vmatpush3.msra.mxu0 %v24_v7 }
   0xf   :  { %160 = vmatprep.subr.mxu0 %v187_v0 }
  0x10   :  { %161 = vmatpush3.msra.mxu0 %v23_v8 }
  0x11   :  { %162 = vmatprep.subr.mxu0 %v187_v0 }
  0x12   :  { %163 = vmatpush3.msra.mxu0 %v22_v9 }
  0x13   :  { %164 = vmatprep.subr.mxu0 %v187_v0 }
  0x14   :  { %165 = vmatpush3.msra.mxu0 %v21_v10 }
  0x15   :  { %166 = vmatprep.subr.mxu0 %v187_v0 }
  0x16   :  { %167 = vmatpush3.msra.mxu0 %v20_v11 }
  0x17   :  { %168 = vmatprep.subr.mxu0 %v187_v0 }
  0x18   :  { %169 = vmatpush3.msra.mxu0 %v19_v12 }
  0x19   :  { %170 = vmatprep.subr.mxu0 %v187_v0 }
  0x1a   :  { %171 = vmatpush3.msra.mxu0 %v18_v13 }
  0x1b   :  { %172 = vmatprep.subr.mxu0 %v187_v0 }
  0x1c   :  { %173 = vmatpush3.msra.mxu0 %v17_v14 }
  0x1d   :  { %174 = vmatprep.subr.mxu0 %v187_v0 }
  0x1e   :  { %175 = vmatpush3.msra.mxu0 %v16_v15 }
  0x1f   :  { %176 = vmatprep.subr.mxu0 %v187_v0 }
  0x20   :  { %177 = vmatpush3.msra.mxu0 %v15_v16 }
  0x21   :  { %179 = vmatmul.mubr.f32.vlgmr.msra.gmra.mxu0 %v14_v17 }
  0xe1   :  { %v104_v21 = vpop.f32.mrf.mxu0 }
  0xe2   :  { %v105_v22 = vadd.f32 %v128_v20, %v104_v21 }
  0xe3   :  { %v180_v23 = vpop.f32.mrf.mxu0 }
  0xe4   :  { %v113_v24 = vsel %vm110_vm1, %v105_v22, -1e+30 }
  0xe5   :  { %114 = vmax.xlane.f32.xlu0 %v113_v24 }
 0x16e   :  { %v115_v25 = vpop.xlane.xlu0 %114 }
 0x16f   :  { %v116_v26 = vsub.f32 %v113_v24, %v115_v25 }
 0x171   :  { %v117_v27 = vmul.f32 1.442695, %v116_v26 }
 0x173   :  { %183 = vpow2.f32 %v117_v27 }
 0x180   :  { %v184_v28 = vpop.eup %183 }
 0x181   :  { %119 = vadd.xlane.f32.xlu0 %v184_v28 }
 0x20a   :  { %v120_v29 = vpop.xlane.xlu0 %119 }
 0x20b   :  { %185 = vrcp.f32 %v120_v29 }
 0x218   :  { %v186_v30 = vpop.eup %185 }
 0x219   :  { %v122_v31 = vmul.f32 %v186_v30, %v184_v28 }
 0x21b   :  { %123 = vst [vmem:[%s269_s3] sm:$0xff] %v122_v31 }

</bundles_post_ra>
